<compile_context>
chip_gen: v7x
topology: tpu7x:2x2x1
jax: 0.10.0
libtpu: 0.0.40
codegen_flags: <defaults>
</compile_context>

<pallas_src>
import math

import jax
import jax.numpy as jnp
from jax.experimental import pallas as pl
from jax.experimental.pallas import tpu as pltpu


HIDDEN1 = 128
HIDDEN2 = 64
MAX_BATCH_TILE = 1024


def _round_up(x, m):
    return (x + m - 1) // m * m


# ---------------------------------------------------------------------------
# Pallas kernel: fused 3-layer MLP for one batch tile.
# Weights arrive as resident bf16 VMEM refs; matmuls run bf16 x bf16 on the
# MXU with f32 accumulation; bias adds and ReLU are f32.
# ---------------------------------------------------------------------------
def mlp_kernel(x_ref, w1_ref, b1_ref, w2_ref, b2_ref, w3_ref, b3_ref, o_ref):
    f32 = jnp.float32
    bf16 = jnp.bfloat16

    x = x_ref[...].astype(bf16)
    h1 = jnp.dot(x, w1_ref[...], preferred_element_type=f32) + b1_ref[...]
    h1 = jnp.maximum(h1, 0.0)

    h2 = jnp.dot(h1.astype(bf16), w2_ref[...], preferred_element_type=f32) + b2_ref[...]
    h2 = jnp.maximum(h2, 0.0)

    o_ref[...] = (
        jnp.dot(h2.astype(bf16), w3_ref[...], preferred_element_type=f32) + b3_ref[...]
    )


# ---------------------------------------------------------------------------
# One-time packing of logical f32 params into kernel-ready arrays.
# ---------------------------------------------------------------------------
def pack_params(params):
    return {
        "w1": params["w1"].astype(jnp.bfloat16),              # [in, 128]
        "b1": params["b1"].reshape(1, -1).astype(jnp.float32),  # [1, 128]
        "w2": params["w2"].astype(jnp.bfloat16),              # [128, 64]
        "b2": params["b2"].reshape(1, -1).astype(jnp.float32),  # [1, 64]
        "w3": params["w3"].astype(jnp.bfloat16),              # [64, out]
        "b3": params["b3"].reshape(1, -1).astype(jnp.float32),  # [1, out]
    }


def _gather_features(state_dict):
    location = state_dict["location"]
    status = state_dict["status"]
    rays = state_dict["rays"]
    relative_pos = state_dict.get("relative_pos", jnp.zeros_like(location))
    time_features = state_dict.get(
        "time_features", jnp.zeros((location.shape[0], 2), dtype=location.dtype))
    return [location, status, rays, relative_pos, time_features]


# ---------------------------------------------------------------------------
# Wrapper: batch-tiled pallas_call over a single concatenated input.
# ---------------------------------------------------------------------------
def improved_dqn_forward(packed, state_dict):
    feats = _gather_features(state_dict)
    x = jnp.concatenate(feats, axis=1).astype(jnp.float32)   # [B, in_dim]
    B, in_dim = x.shape
    out_dim = packed["w3"].shape[1]

    # Adaptive batch tile: amortize per-step overhead, but keep >= 2 grid steps
    # so the "parallel" axis shards across both v7x TensorCores.
    tb = max(8, min(MAX_BATCH_TILE, _round_up(pl.cdiv(B, 2), 8)))
    B_pad = _round_up(B, tb)
    if B_pad != B:
        x = jnp.pad(x, ((0, B_pad - B), (0, 0)))

    grid = (B_pad // tb,)

    def rep(arr):
        # Resident weights/biases: same full-array block every grid step.
        return pl.BlockSpec(arr.shape, lambda i: (0, 0))

    in_specs = [
        pl.BlockSpec((tb, in_dim), lambda i: (i, 0)),
        rep(packed["w1"]), rep(packed["b1"]),
        rep(packed["w2"]), rep(packed["b2"]),
        rep(packed["w3"]), rep(packed["b3"]),
    ]
    out_specs = pl.BlockSpec((tb, out_dim), lambda i: (i, 0))

    flops = 2 * B_pad * (in_dim * HIDDEN1 + HIDDEN1 * HIDDEN2 + HIDDEN2 * out_dim)
    weight_bytes = sum(
        int(packed[k].size) * packed[k].dtype.itemsize
        for k in ("w1", "b1", "w2", "b2", "w3", "b3"))
    act_bytes = int(x.size) * x.dtype.itemsize + B_pad * out_dim * 4

    out = pl.pallas_call(
        mlp_kernel,
        out_shape=jax.ShapeDtypeStruct((B_pad, out_dim), jnp.float32),
        grid=grid,
        in_specs=in_specs,
        out_specs=out_specs,
        compiler_params=pltpu.CompilerParams(
            dimension_semantics=("parallel",)),
        cost_estimate=pl.CostEstimate(
            flops=flops, transcendentals=0,
            bytes_accessed=weight_bytes + act_bytes),
    )(x, packed["w1"], packed["b1"], packed["w2"], packed["b2"],
      packed["w3"], packed["b3"])

    return out[:B] if B_pad != B else out


# ---------------------------------------------------------------------------
# Parameter init matching the PyTorch module (Xavier-uniform W, zero bias).
# Weights are stored [in, out] (kernel consumes x @ W).
# ---------------------------------------------------------------------------
def xavier_uniform(key, fan_in, fan_out):
    bound = math.sqrt(6.0 / (fan_in + fan_out))
    w = jax.random.uniform(key, (fan_out, fan_in), jnp.float32, -bound, bound)
    return w.T


def init_params(key, input_dim, output_dim):
    k1, k2, k3 = jax.random.split(key, 3)
    return {
        "w1": xavier_uniform(k1, input_dim, HIDDEN1),
        "b1": jnp.zeros((HIDDEN1,), jnp.float32),
        "w2": xavier_uniform(k2, HIDDEN1, HIDDEN2),
        "b2": jnp.zeros((HIDDEN2,), jnp.float32),
        "w3": xavier_uniform(k3, HIDDEN2, output_dim),
        "b3": jnp.zeros((output_dim,), jnp.float32),
    }


# ---------------------------------------------------------------------------
# Pure-JAX reference with the same numerics as the kernel
# (bf16 weights AND bf16 activation inputs to each matmul, f32 accumulation).
# ---------------------------------------------------------------------------
def reference_forward(params, state_dict):
    x = jnp.concatenate(_gather_features(state_dict), axis=1).astype(jnp.float32)

    def bf(a):
        return a.astype(jnp.bfloat16)

    h1 = jnp.maximum(
        jnp.dot(bf(x), bf(params["w1"]), preferred_element_type=jnp.float32)
        + params["b1"], 0.0)
    h2 = jnp.maximum(
        jnp.dot(bf(h1), bf(params["w2"]), preferred_element_type=jnp.float32)
        + params["b2"], 0.0)
    return (jnp.dot(bf(h2), bf(params["w3"]), preferred_element_type=jnp.float32)
            + params["b3"])


if __name__ == "__main__":
    key = jax.random.PRNGKey(0)
    k_loc, k_stat, k_rays, k_rel, k_time, k_params = jax.random.split(key, 6)

    # Replay-batch-sized call; deliberately not a multiple of the batch tile
    # so the padding path and the 2-step grid are exercised.
    B = 200
    loc_dim, stat_dim, ray_dim, time_dim = 2, 4, 8, 2
    input_dim = loc_dim + stat_dim + ray_dim + loc_dim + time_dim   # 18
    output_dim = 4                                                  # actions

    state_dict = {
        "location": jax.random.normal(k_loc, (B, loc_dim), dtype=jnp.float32),
        "status": jax.random.normal(k_stat, (B, stat_dim), dtype=jnp.float32),
        "rays": jax.random.normal(k_rays, (B, ray_dim), dtype=jnp.float32),
        "relative_pos": jax.random.normal(k_rel, (B, loc_dim), dtype=jnp.float32),
        "time_features": jax.random.normal(k_time, (B, time_dim), dtype=jnp.float32),
    }

    params = init_params(k_params, input_dim, output_dim)
    packed = pack_params(params)

    out = improved_dqn_forward(packed, state_dict)
    out = jax.block_until_ready(out)

    ref = reference_forward(params, state_dict)
    assert out.shape == (B, output_dim), out.shape
    max_err = float(jnp.max(jnp.abs(out - ref)))
    assert jnp.allclose(out, ref, atol=1e-2, rtol=1e-2), (
        f"Pallas output mismatch vs reference (max abs err {max_err})")

    print("KERNEL_OK")
</pallas_src>

<mosaic_0001>
module attributes {stable_mosaic.version = 11 : i64} {
  func.func @mlp_kernel(%arg0: i32, %arg1: memref<104x18xf32, #tpu.memory_space<vmem>>, %arg2: memref<18x128xbf16, #tpu.memory_space<vmem>>, %arg3: memref<1x128xf32, #tpu.memory_space<vmem>>, %arg4: memref<128x64xbf16, #tpu.memory_space<vmem>>, %arg5: memref<1x64xf32, #tpu.memory_space<vmem>>, %arg6: memref<64x4xbf16, #tpu.memory_space<vmem>>, %arg7: memref<1x4xf32, #tpu.memory_space<vmem>>, %arg8: memref<104x4xf32, #tpu.memory_space<vmem>>) attributes {dimension_semantics = [#tpu.dimension_semantics<parallel>], iteration_bounds = array<i64: 2>, scalar_prefetch = 0 : i64, scratch_operands = 0 : i64, tpu.core_type = #tpu.core_type<tc>, window_params = [{transform_indices = @transform_0, window_bounds = array<i64: 104, 18>}, {pipeline_mode = #tpu.pipeline_mode<synchronous>, transform_indices = @transform_1, window_bounds = array<i64: 18, 128>}, {pipeline_mode = #tpu.pipeline_mode<synchronous>, transform_indices = @transform_2, window_bounds = array<i64: 1, 128>}, {pipeline_mode = #tpu.pipeline_mode<synchronous>, transform_indices = @transform_3, window_bounds = array<i64: 128, 64>}, {pipeline_mode = #tpu.pipeline_mode<synchronous>, transform_indices = @transform_4, window_bounds = array<i64: 1, 64>}, {pipeline_mode = #tpu.pipeline_mode<synchronous>, transform_indices = @transform_5, window_bounds = array<i64: 64, 4>}, {pipeline_mode = #tpu.pipeline_mode<synchronous>, transform_indices = @transform_6, window_bounds = array<i64: 1, 4>}, {transform_indices = @transform_7, window_bounds = array<i64: 104, 4>}]} {
    %c0 = arith.constant 0 : index
    %c0_0 = arith.constant 0 : index
    %0 = vector.load %arg1[%c0, %c0_0] : memref<104x18xf32, #tpu.memory_space<vmem>>, vector<104x18xf32>
    %1 = arith.truncf %0 : vector<104x18xf32> to vector<104x18xbf16>
    %c0_1 = arith.constant 0 : index
    %c0_2 = arith.constant 0 : index
    %2 = vector.load %arg2[%c0_1, %c0_2] : memref<18x128xbf16, #tpu.memory_space<vmem>>, vector<18x128xbf16>
    %cst = arith.constant dense<0.000000e+00> : vector<104x128xf32>
    %3 = tpu.matmul %1, %2, %cst {dimension_numbers = #tpu.dot_dimension_numbers<[1], [0], [0], [1], [0, 0, 1, 1], [], []>} : vector<104x18xbf16>, vector<18x128xbf16>, vector<104x128xf32> -> vector<104x128xf32>
    %c0_3 = arith.constant 0 : index
    %c0_4 = arith.constant 0 : index
    %4 = vector.load %arg3[%c0_3, %c0_4] : memref<1x128xf32, #tpu.memory_space<vmem>>, vector<1x128xf32>
    %5 = vector.broadcast %4 : vector<1x128xf32> to vector<104x128xf32>
    %6 = arith.addf %3, %5 : vector<104x128xf32>
    %cst_5 = arith.constant 0.000000e+00 : f32
    %7 = vector.broadcast %cst_5 : f32 to vector<104x128xf32>
    %8 = arith.maximumf %6, %7 : vector<104x128xf32>
    %9 = arith.truncf %8 : vector<104x128xf32> to vector<104x128xbf16>
    %c0_6 = arith.constant 0 : index
    %c0_7 = arith.constant 0 : index
    %10 = vector.load %arg4[%c0_6, %c0_7] : memref<128x64xbf16, #tpu.memory_space<vmem>>, vector<128x64xbf16>
    %cst_8 = arith.constant dense<0.000000e+00> : vector<104x64xf32>
    %11 = tpu.matmul %9, %10, %cst_8 {dimension_numbers = #tpu.dot_dimension_numbers<[1], [0], [0], [1], [0, 0, 1, 1], [], []>} : vector<104x128xbf16>, vector<128x64xbf16>, vector<104x64xf32> -> vector<104x64xf32>
    %c0_9 = arith.constant 0 : index
    %c0_10 = arith.constant 0 : index
    %12 = vector.load %arg5[%c0_9, %c0_10] : memref<1x64xf32, #tpu.memory_space<vmem>>, vector<1x64xf32>
    %13 = vector.broadcast %12 : vector<1x64xf32> to vector<104x64xf32>
    %14 = arith.addf %11, %13 : vector<104x64xf32>
    %cst_11 = arith.constant 0.000000e+00 : f32
    %15 = vector.broadcast %cst_11 : f32 to vector<104x64xf32>
    %16 = arith.maximumf %14, %15 : vector<104x64xf32>
    %17 = arith.truncf %16 : vector<104x64xf32> to vector<104x64xbf16>
    %c0_12 = arith.constant 0 : index
    %c0_13 = arith.constant 0 : index
    %18 = vector.load %arg6[%c0_12, %c0_13] : memref<64x4xbf16, #tpu.memory_space<vmem>>, vector<64x4xbf16>
    %cst_14 = arith.constant dense<0.000000e+00> : vector<104x4xf32>
    %19 = tpu.matmul %17, %18, %cst_14 {dimension_numbers = #tpu.dot_dimension_numbers<[1], [0], [0], [1], [0, 0, 1, 1], [], []>} : vector<104x64xbf16>, vector<64x4xbf16>, vector<104x4xf32> -> vector<104x4xf32>
    %c0_15 = arith.constant 0 : index
    %c0_16 = arith.constant 0 : index
    %20 = vector.load %arg7[%c0_15, %c0_16] : memref<1x4xf32, #tpu.memory_space<vmem>>, vector<1x4xf32>
    %21 = vector.broadcast %20 : vector<1x4xf32> to vector<104x4xf32>
    %22 = arith.addf %19, %21 : vector<104x4xf32>
    %c0_17 = arith.constant 0 : index
    %c0_18 = arith.constant 0 : index
    %23 = vector.load %arg8[%c0_17, %c0_18] : memref<104x4xf32, #tpu.memory_space<vmem>>, vector<104x4xf32>
    tpu.vector_store %arg8[%c0_17, %c0_18], %22 {strides = array<i32>} : memref<104x4xf32, #tpu.memory_space<vmem>>, vector<104x4xf32>,
    return
  }
  func.func @transform_0(%arg0: i32) -> (i32, i32) {
    %c0_i32 = arith.constant 0 : i32
    %c0_i32_0 = arith.constant 0 : i32
    return %arg0, %c0_i32 : i32, i32
  }
  func.func @transform_1(%arg0: i32) -> (i32, i32) {
    %c0_i32 = arith.constant 0 : i32
    %c0_i32_0 = arith.constant 0 : i32
    %c0_i32_1 = arith.constant 0 : i32
    return %c0_i32, %c0_i32_0 : i32, i32
  }
  func.func @transform_2(%arg0: i32) -> (i32, i32) {
    %c0_i32 = arith.constant 0 : i32
    %c0_i32_0 = arith.constant 0 : i32
    %c0_i32_1 = arith.constant 0 : i32
    return %c0_i32, %c0_i32_0 : i32, i32
  }
  func.func @transform_3(%arg0: i32) -> (i32, i32) {
    %c0_i32 = arith.constant 0 : i32
    %c0_i32_0 = arith.constant 0 : i32
    %c0_i32_1 = arith.constant 0 : i32
    return %c0_i32, %c0_i32_0 : i32, i32
  }
  func.func @transform_4(%arg0: i32) -> (i32, i32) {
    %c0_i32 = arith.constant 0 : i32
    %c0_i32_0 = arith.constant 0 : i32
    %c0_i32_1 = arith.constant 0 : i32
    return %c0_i32, %c0_i32_0 : i32, i32
  }
  func.func @transform_5(%arg0: i32) -> (i32, i32) {
    %c0_i32 = arith.constant 0 : i32
    %c0_i32_0 = arith.constant 0 : i32
    %c0_i32_1 = arith.constant 0 : i32
    return %c0_i32, %c0_i32_0 : i32, i32
  }
  func.func @transform_6(%arg0: i32) -> (i32, i32) {
    %c0_i32 = arith.constant 0 : i32
    %c0_i32_0 = arith.constant 0 : i32
    %c0_i32_1 = arith.constant 0 : i32
    return %c0_i32, %c0_i32_0 : i32, i32
  }
  func.func @transform_7(%arg0: i32) -> (i32, i32) {
    %c0_i32 = arith.constant 0 : i32
    %c0_i32_0 = arith.constant 0 : i32
    return %arg0, %c0_i32 : i32, i32
  }
}

</mosaic_0001>

<bundles_post_ra>
// kernel: tpu_custom_call.1
= control target key start
LH: loop header
LB: loop body
LE: loop exit
PB: predicated region body
PF: predicated region fallthrough
CT: control target
= control target key end

     0   :  { %s1119_s24 = smov 0   ;;  %s1339_s0 = inlined_call_operand.vmem [shape: f32[208,18], index: 0, kind: input, shape index: {}]   ;;  %s1340_s1 = inlined_call_operand.vmem [shape: bf16[18,128], index: 1, kind: input, shape index: {}]   ;;  %s1341_s2 = inlined_call_operand.vmem [shape: f32[1,128], index: 2, kind: input, shape index: {}]   ;;  %s1342_s3 = inlined_call_operand.vmem [shape: bf16[128,64], index: 3, kind: input, shape index: {}]   ;;  %s1343_s4 = inlined_call_operand.vmem [shape: f32[1,64], index: 4, kind: input, shape index: {}]   ;;  %s1344_s5 = inlined_call_operand.vmem [shape: bf16[64,4], index: 5, kind: input, shape index: {}]   ;;  %s1345_s6 = inlined_call_operand.vmem [shape: f32[1,4], index: 6, kind: input, shape index: {}]   ;;  %s1346_s7 = inlined_call_operand.vmem [shape: f32[208,4], index: 7, kind: output, shape index: {}]  }
   0x1 LB: > { %s854_s25 = sadd.s32 4294967295, %s1075_s24   ;;  %p858_p0 = scmp.ge.s32.totalorder %s1075_s24, 1  ;;  %s1075_s24 = sphi %s1119_s24, %s17_s24  }
   0x2   : > { %p238_p1 = scmp.lt.s32.totalorder %s1075_s24, 3 }
   0x4   : > { %p239_p2 = pnand %p858_p0, %p238_p1 }
   0x5   : > { %v1055_v0 = vld [vmem:[%s1340_s1] sm:$0xff] (!%p239_p2)   ;;  %v1077_v1 = vmov (!%p239_p2), 0.0   ;;  %v1056_v2 = vld [vmem:[%s1340_s1 + $0x8] ss:$0 sps:$4 sm:$0x11] (!%p239_p2)   ;;  %vm344_vm0 = vcmask (!%p239_p2), 1040384  }
   0x6   : > { %242 = sbr.rel (%p239_p2) target bundleno = 722 (0x2d2), region = 48  ;;  %929 = vmatprep.subr.bf16.mxu0 (!%p239_p2), %v1077_v1  ;;  %1041 = vmatprep.subr.bf16.mxu1 (!%p239_p2), %v1077_v1  ;;  %v346_v3 = vsel (!%p239_p2), %vm344_vm0, %v1056_v2, 0  ;;  %vm1078_vm1 = vmmov (!%p239_p2), 0   ;;  %vm322_vm2 = vcmask (!%p239_p2), 146432   ;;  %v1057_v9 = vld [vmem:[%s1342_s3] sm:$0xff] (!%p239_p2)   ;;  %v1058_v15 = vld [vmem:[%s1342_s3 + $0x8] sm:$0xff] (!%p239_p2)  }
   0x7   : > { %930 = vmatpush3.bf16.msra.mxu0 (!%p239_p2), %v1055_v0  ;;  %s270_s30 = smul.u32 (!%p239_p2), 13, %s854_s25  ;;  %1043 = vmatpush3.bf16.msra.mxu1 (!%p239_p2), %v1055_v0  ;;  %v1059_v18 = vld [vmem:[%s1342_s3 + $0x10] sm:$0xff] (!%p239_p2)   ;;  %v1060_v23 = vld [vmem:[%s1342_s3 + $0x18] sm:$0xff] (!%p239_p2)   ;;  %v1061_v26 = vld [vmem:[%s1342_s3 + $0x20] sm:$0xff] (!%p239_p2)   ;;  %vm674_vm3 = vcmask (!%p239_p2), 523264   ;;  %vm784_vm4 = vcmask (!%p239_p2), 31744  }
   0x8   : > { %931 = vmatprep.subr.bf16.mxu0 (!%p239_p2), %v1077_v1  ;;  %933 = vmatprep.mubr.msk.bf16.mxu0 (!%p239_p2), %vm1078_vm1, %v1077_v1  ;;  %v1062_v28 = vld [vmem:[%s1342_s3 + $0x28] sm:$0xff] (!%p239_p2)   ;;  %v1063_v30 = vld [vmem:[%s1342_s3 + $0x30] sm:$0xff] (!%p239_p2)   ;;  %v1064_v31 = vld [vmem:[%s1342_s3 + $0x38] sm:$0xff] (!%p239_p2)  }
   0x9   : > { %p271_p3 = scmp.lt.s32.totalorder (!%p239_p2), %s270_s30, 25  ;;  %1042 = vmatprep.subr.bf16.mxu1 (!%p239_p2), %v1077_v1  ;;  %945 = vmatprep.mubr.msk.bf16.mxu1 (!%p239_p2), %vm1078_vm1, %v1077_v1  ;;  %v1065_v32 = vld [vmem:[%s1344_s5] sm:$0xff] (!%p239_p2)   ;;  %v1066_v33 = vld [vmem:[%s1344_s5 + $0x8] sm:$0xff] (!%p239_p2)   ;;  %v1067_v34 = vld [vmem:[%s1344_s5 + $0x10] sm:$0xff] (!%p239_p2)  }
   0xa   : > { %v1233_v35 = vld [vmem:[%s1341_s2] ss:$0 sm:$0xff] (!%p239_p2) }
   0xb   : > { %932 = vmatpush3.bf16.msra.mxu0 (!%p239_p2), %v346_v3  ;;  %1044 = vmatpush3.bf16.msra.mxu1 (!%p239_p2), %v346_v3 }
   0xc   : > { %961 = vmatprep.subr.bf16.mxu1 (!%p239_p2), %v1077_v1  ;;  %1005 = vmatprep.subr.bf16.mxu0 (!%p239_p2), %v1077_v1 }
   0xd   : > { %s1348_s30 = smov (!%p271_p3, %s270_s30), 25 }
   0xe   : > { %s859_s8 = sshll.u32 %s1348_s30, 3 }
   0xf   : > { %s1151_s11 = scalar_lea.vmem %s1339_s0, %s859_s8  ;;  %s1308_s25 = scalar_lea.vmem %s1346_s7, %s859_s8 }
  0x10   : > { %v283_v4 = vld [vmem:[%s1151_s11] sm:$0xff]  ;;  %v284_v5 = vld [vmem:[%s1151_s11 + $0x8] sm:$0xff]  ;;  %v289_v7 = vld [vmem:[%s1151_s11 + $0x30] sm:$0xff] }
  0x11   : > { %v296_v6 = vpack.c.bf16 %v284_v5, %v283_v4  ;;  %v290_v8 = vld [vmem:[%s1151_s11 + $0x38] sm:$0xff]  ;;  %v285_v10 = vld [vmem:[%s1151_s11 + $0x10] sm:$0xff]  ;;  %v291_v13 = vld [vmem:[%s1151_s11 + $0x40] sm:$0xff] }
  0x12   : > { %v286_v11 = vld [vmem:[%s1151_s11 + $0x18] sm:$0xff]  ;;  %v299_v12 = vpack.c.bf16 %v290_v8, %v289_v7  ;;  %v292_v14 = vld [vmem:[%s1151_s11 + $0x48] sm:$0xff]  ;;  %v287_v19 = vld [vmem:[%s1151_s11 + $0x20] sm:$0xff] }
  0x13   : > { %934 = vmatmul.mubr.msk.bf16.vlgmr.msra.gmra.mrb[0].mxu0 %vm322_vm2, %v296_v6  ;;  %v297_v16 = vpack.c.bf16 %v286_v11, %v285_v10  ;;  %v300_v17 = vpack.c.bf16 %v292_v14, %v291_v13  ;;  %v288_v20 = vld [vmem:[%s1151_s11 + $0x28] sm:$0xff]  ;;  %v293_v21 = vld [vmem:[%s1151_s11 + $0x50] sm:$0xff]  ;;  %v294_v22 = vld [vmem:[%s1151_s11 + $0x58] sm:$0xff] }
  0x14   : > { %937 = vmatprep.mubr.msk.bf16.mxu0 %vm1078_vm1, %v1077_v1  ;;  %946 = vmatmul.mubr.msk.bf16.vlgmr.msra.gmra.mrb[0].mxu1 %vm322_vm2, %v299_v12  ;;  %v298_v24 = vpack.c.bf16 %v288_v20, %v287_v19  ;;  %v301_v25 = vpack.c.bf16 %v294_v22, %v293_v21  ;;  %v295_v27 = vld [vmem:[%s1151_s11 + $0x60] sm:$0xff] }
  0x15   : > { %949 = vmatprep.mubr.msk.bf16.mxu1 %vm1078_vm1, %v1077_v1  ;;  %962 = vmatpush3.bf16.msra.mxu1 %v1057_v9  ;;  %v302_v29 = vpack.c.bf16 %v295_v27, %v295_v27 }
  0x16   : > { %963 = vmatprep.subr.bf16.mxu1 %v1077_v1  ;;  %1006 = vmatpush3.bf16.msra.mxu0 %v1065_v32 }
  0x17   : > { %1007 = vmatprep.subr.bf16.mxu0 %v1077_v1 }
  0x19   : > { %964 = vmatpush3.bf16.msra.mxu1 %v1058_v15 }
  0x1a   : > { %965 = vmatprep.subr.bf16.mxu1 %v1077_v1  ;;  %1008 = vmatpush3.bf16.msra.mxu0 %v1066_v33 }
  0x1b   : > { %938 = vmatmul.mubr.msk.bf16.gmra.mrb[4].mxu0 %vm322_vm2, %v297_v16  ;;  %1009 = vmatprep.subr.bf16.mxu0 %v1077_v1 }
  0x1c   : > { %941 = vmatprep.mubr.msk.bf16.mxu0 %vm1078_vm1, %v1077_v1  ;;  %950 = vmatmul.mubr.msk.bf16.gmra.mrb[4].mxu1 %vm322_vm2, %v300_v17 }
  0x1d   : > { %953 = vmatprep.mubr.msk.bf16.mxu1 %vm1078_vm1, %v1077_v1  ;;  %966 = vmatpush3.bf16.msra.mxu1 %v1059_v18 }
  0x1e   : > { %967 = vmatprep.subr.bf16.mxu1 %v1077_v1  ;;  %1010 = vmatpush3.bf16.msra.mxu0 %v1067_v34  ;;  %v1068_v34 = vld [vmem:[%s1344_s5 + $0x18] sm:$0xff]  }
  0x1f   : > { %1011 = vmatprep.subr.bf16.mxu0 %v1077_v1 }
  0x21   : > { %968 = vmatpush3.bf16.msra.mxu1 %v1060_v23 }
  0x22   : > { %969 = vmatprep.subr.bf16.mxu1 %v1077_v1  ;;  %1012 = vmatpush3.bf16.msra.mxu0 %v1068_v34  ;;  %v880_v34 = vld [vmem:[%s1345_s6] ss:$0 sm:$0xff] }
  0x23   : > { %942 = vmatmul.mubr.msk.bf16.gmra.mrb[8].mxu0 %vm322_vm2, %v298_v24 }
  0x24   : > { %1013 = vmatprep.mubr.msk.bf16.mxu0 %vm1078_vm1, %v1077_v1  ;;  %954 = vmatmul.mubr.msk.bf16.gmra.mrb[8].mxu1 %vm322_vm2, %v301_v25 }
  0x25   : > { %957 = vmatprep.mubr.msk.bf16.mxu1 %vm1078_vm1, %v1077_v1  ;;  %970 = vmatpush3.bf16.msra.mxu1 %v1061_v26 }
  0x26   : > { %971 = vmatprep.subr.bf16.mxu1 %v1077_v1 }
  0x29   : > { %972 = vmatpush3.bf16.msra.mxu1 %v1062_v28 }
  0x2a   : > { %973 = vmatprep.subr.bf16.mxu1 %v1077_v1 }
  0x2c   : > { %958 = vmatmul.mubr.msk.bf16.gmra.mrb[12].mxu1 %vm322_vm2, %v302_v29 }
  0x2d   : > { %977 = vmatprep.mubr.msk.bf16.mxu1 %vm1078_vm1, %v1077_v1  ;;  %974 = vmatpush3.bf16.msra.mxu1 %v1063_v30 }
  0x2e   : > { %975 = vmatprep.subr.bf16.mxu1 %v1077_v1 }
  0x31   : > { %976 = vmatpush3.bf16.msra.mxu1 %v1064_v31 }
  0xe6   : > { %v382_v36 = vpop.f32.mrb[0].mxu0 }
  0xe7   : > { %v383_v37 = vadd.f32 %v1233_v35, %v382_v36  ;;  %v935_v38 = vpop.f32.mrb[1].mxu0  ;;  %v406_v40 = vpop.f32.mrb[0].mxu1  ;;  %v1266_v36 = vld [vmem:[%s1343_s4] ss:$0 sm:$0xff] }
  0xe8   : > { %v385_v39 = vpop.f32.mrb[2].mxu0  ;;  %v407_v43 = vadd.f32 %v1233_v35, %v406_v40  ;;  %v947_v44 = vpop.f32.mrb[1].mxu1 }
  0xe9   : > { %v386_v41 = vadd.f32 %v1233_v35, %v385_v39  ;;  %v936_v42 = vpop.f32.mrb[3].mxu0  ;;  %v409_v45 = vpop.f32.mrb[2].mxu1  ;;  %v436_v46 = vmax.f32 %v383_v37, 0.0 }
  0xea   : > { %v442_v48 = vmax.f32 %v407_v43, 0.0  ;;  %v410_v49 = vadd.f32 %v1233_v35, %v409_v45  ;;  %v948_v50 = vpop.f32.mrb[3].mxu1 }
  0xeb   : > { %v437_v47 = vmax.f32 %v386_v41, 0.0 }
  0xec   : > { %v443_v52 = vmax.f32 %v410_v49, 0.0 }
  0xed   : > { %v449_v51 = vpack.c.bf16 %v437_v47, %v436_v46 }
  0xee   : > { %v390_v53 = vpop.f32.mrb[4].mxu0  ;;  %v452_v56 = vpack.c.bf16 %v443_v52, %v442_v48 }
  0xef   : > { %v391_v54 = vadd.f32 %v1233_v35, %v390_v53  ;;  %v939_v55 = vpop.f32.mrb[5].mxu0  ;;  %978 = vmatmul.mubr.bf16.vlgmr.msra.gmra.mrb[16].mxu1 %v449_v51  ;;  %v414_v58 = vpop.f32.mrb[4].mxu1 }
  0xf0   : > { %v393_v57 = vpop.f32.mrb[6].mxu0  ;;  %981 = vmatprep.mubr.msk.bf16.mxu1 %vm1078_vm1, %v1077_v1  ;;  %v415_v61 = vadd.f32 %v1233_v35, %v414_v58  ;;  %v951_v62 = vpop.f32.mrb[5].mxu1 }
  0xf1   : > { %v394_v59 = vadd.f32 %v1233_v35, %v393_v57  ;;  %v940_v60 = vpop.f32.mrb[7].mxu0  ;;  %v417_v63 = vpop.f32.mrb[6].mxu1  ;;  %v438_v0 = vmax.f32 %v391_v54, 0.0 }
  0xf2   : > { %v444_v3 = vmax.f32 %v415_v61, 0.0  ;;  %v418_v4 = vadd.f32 %v1233_v35, %v417_v63  ;;  %v952_v5 = vpop.f32.mrb[7].mxu1 }
  0xf3   : > { %v439_v2 = vmax.f32 %v394_v59, 0.0 }
  0xf4   : > { %v445_v7 = vmax.f32 %v418_v4, 0.0 }
  0xf5   : > { %v450_v6 = vpack.c.bf16 %v439_v2, %v438_v0 }
  0xf6   : > { %v398_v8 = vpop.f32.mrb[8].mxu0  ;;  %v453_v11 = vpack.c.bf16 %v445_v7, %v444_v3 }
  0xf7   : > { %v399_v9 = vadd.f32 %v1233_v35, %v398_v8  ;;  %v943_v10 = vpop.f32.mrb[9].mxu0  ;;  %982 = vmatmul.mubr.bf16.gmra.mrb[20].mxu1 %v450_v6  ;;  %v422_v13 = vpop.f32.mrb[8].mxu1 }
  0xf8   : > { %v401_v12 = vpop.f32.mrb[10].mxu0  ;;  %985 = vmatprep.mubr.msk.bf16.mxu1 %vm1078_vm1, %v1077_v1  ;;  %v423_v16 = vadd.f32 %v1233_v35, %v422_v13  ;;  %v955_v17 = vpop.f32.mrb[9].mxu1 }
  0xf9   : > { %v402_v14 = vadd.f32 %v1233_v35, %v401_v12  ;;  %v944_v15 = vpop.f32.mrb[11].mxu0  ;;  %v425_v18 = vpop.f32.mrb[10].mxu1  ;;  %v440_v19 = vmax.f32 %v399_v9, 0.0 }
  0xfa   : > { %v446_v21 = vmax.f32 %v423_v16, 0.0  ;;  %v426_v22 = vadd.f32 %v1233_v35, %v425_v18  ;;  %v956_v23 = vpop.f32.mrb[11].mxu1 }
  0xfb   : > { %v441_v20 = vmax.f32 %v402_v14, 0.0 }
  0xfc   : > { %v447_v25 = vmax.f32 %v426_v22, 0.0 }
  0xfd   : > { %v451_v24 = vpack.c.bf16 %v441_v20, %v440_v19 }
  0xfe   : > { %v454_v26 = vpack.c.bf16 %v447_v25, %v446_v21 }
  0xff   : > { %986 = vmatmul.mubr.bf16.gmra.mrb[24].mxu1 %v451_v24  ;;  %v430_v27 = vpop.f32.mrb[12].mxu1 }
 0x100   : > { %989 = vmatprep.mubr.msk.bf16.mxu1 %vm1078_vm1, %v1077_v1  ;;  %v959_v28 = vpop.f32.mrb[13].mxu1  ;;  %v431_v31 = vadd.f32 %v1233_v35, %v430_v27 }
 0x101   : > { %v433_v29 = vpop.f32.mrb[14].mxu1 }
 0x102   : > { %v960_v30 = vpop.f32.mrb[15].mxu1  ;;  %v448_v32 = vmax.f32 %v431_v31, 0.0 }
 0x104   : > { %v455_v33 = vpack.c.bf16 %v448_v32, %v448_v32 }
 0x107   : > { %990 = vmatmul.mubr.bf16.gmra.mrb[28].mxu1 %v452_v56 }
 0x108   : > { %993 = vmatprep.mubr.msk.bf16.mxu1 %vm1078_vm1, %v1077_v1 }
 0x10f   : > { %994 = vmatmul.mubr.bf16.gmra.mrb[32].mxu1 %v453_v11 }
 0x110   : > { %997 = vmatprep.mubr.msk.bf16.mxu1 %vm1078_vm1, %v1077_v1 }
 0x117   : > { %998 = vmatmul.mubr.bf16.gmra.mrb[36].mxu1 %v454_v26 }
 0x118   : > { %1001 = vmatprep.mubr.msk.bf16.mxu1 %vm1078_vm1, %v1077_v1 }
 0x11f   : > { %1002 = vmatmul.mubr.bf16.gmra.mrb[40].mxu1 %v455_v33 }
 0x1c2   : > { %v561_v37 = vpop.f32.mrb[16].mxu1 }
 0x1c3   : > { %v562_v35 = vadd.f32 %v1266_v36, %v561_v37  ;;  %v979_v38 = vpop.f32.mrb[17].mxu1 }
 0x1c4   : > { %v564_v39 = vpop.f32.mrb[18].mxu1 }
 0x1c5   : > { %v565_v40 = vadd.f32 %v1266_v36, %v564_v39  ;;  %v980_v41 = vpop.f32.mrb[19].mxu1  ;;  %v615_v42 = vmax.f32 %v562_v35, 0.0 }
 0x1c7   : > { %v616_v43 = vmax.f32 %v565_v40, 0.0 }
 0x1c9   : > { %v628_v44 = vpack.c.bf16 %v616_v43, %v615_v42 }
 0x1ca   : > { %v569_v45 = vpop.f32.mrb[20].mxu1 }
 0x1cb   : > { %v570_v46 = vadd.f32 %v1266_v36, %v569_v45  ;;  %v983_v47 = vpop.f32.mrb[21].mxu1  ;;  %1014 = vmatmul.mubr.msk.bf16.vlgmr.msra.gmra.mrb[12].mxu0 %vm674_vm3, %v628_v44 }
 0x1cc   : > { %v572_v48 = vpop.f32.mrb[22].mxu1  ;;  %1017 = vmatprep.mubr.msk.bf16.mxu0 %vm1078_vm1, %v1077_v1 }
 0x1cd   : > { %v573_v49 = vadd.f32 %v1266_v36, %v572_v48  ;;  %v984_v50 = vpop.f32.mrb[23].mxu1  ;;  %v617_v51 = vmax.f32 %v570_v46, 0.0 }
 0x1cf   : > { %v618_v52 = vmax.f32 %v573_v49, 0.0 }
 0x1d1   : > { %v629_v53 = vpack.c.bf16 %v618_v52, %v617_v51 }
 0x1d2   : > { %v577_v54 = vpop.f32.mrb[24].mxu1 }
 0x1d3   : > { %v578_v55 = vadd.f32 %v1266_v36, %v577_v54  ;;  %v987_v56 = vpop.f32.mrb[25].mxu1  ;;  %1018 = vmatmul.mubr.msk.bf16.gmra.mrb[16].mxu0 %vm674_vm3, %v629_v53 }
 0x1d4   : > { %v580_v57 = vpop.f32.mrb[26].mxu1  ;;  %1021 = vmatprep.mubr.msk.bf16.mxu0 %vm1078_vm1, %v1077_v1 }
 0x1d5   : > { %v581_v58 = vadd.f32 %v1266_v36, %v580_v57  ;;  %v988_v59 = vpop.f32.mrb[27].mxu1  ;;  %v619_v60 = vmax.f32 %v578_v55, 0.0 }
 0x1d7   : > { %v620_v61 = vmax.f32 %v581_v58, 0.0 }
 0x1d9   : > { %v630_v62 = vpack.c.bf16 %v620_v61, %v619_v60 }
 0x1da   : > { %v585_v63 = vpop.f32.mrb[28].mxu1 }
 0x1db   : > { %v586_v0 = vadd.f32 %v1266_v36, %v585_v63  ;;  %v991_v2 = vpop.f32.mrb[29].mxu1  ;;  %1022 = vmatmul.mubr.msk.bf16.gmra.mrb[20].mxu0 %vm674_vm3, %v630_v62 }
 0x1dc   : > { %v588_v3 = vpop.f32.mrb[30].mxu1  ;;  %1025 = vmatprep.mubr.msk.bf16.mxu0 %vm1078_vm1, %v1077_v1 }
 0x1dd   : > { %v589_v4 = vadd.f32 %v1266_v36, %v588_v3  ;;  %v992_v5 = vpop.f32.mrb[31].mxu1  ;;  %v621_v6 = vmax.f32 %v586_v0, 0.0 }
 0x1df   : > { %v622_v7 = vmax.f32 %v589_v4, 0.0 }
 0x1e1   : > { %v631_v8 = vpack.c.bf16 %v622_v7, %v621_v6 }
 0x1e2   : > { %v593_v9 = vpop.f32.mrb[32].mxu1 }
 0x1e3   : > { %v594_v10 = vadd.f32 %v1266_v36, %v593_v9  ;;  %v995_v11 = vpop.f32.mrb[33].mxu1  ;;  %1026 = vmatmul.mubr.msk.bf16.gmra.mrb[24].mxu0 %vm674_vm3, %v631_v8 }
 0x1e4   : > { %v596_v12 = vpop.f32.mrb[34].mxu1  ;;  %1029 = vmatprep.mubr.msk.bf16.mxu0 %vm1078_vm1, %v1077_v1 }
 0x1e5   : > { %v597_v13 = vadd.f32 %v1266_v36, %v596_v12  ;;  %v996_v14 = vpop.f32.mrb[35].mxu1  ;;  %v623_v15 = vmax.f32 %v594_v10, 0.0 }
 0x1e7   : > { %v624_v16 = vmax.f32 %v597_v13, 0.0 }
 0x1e9   : > { %v632_v17 = vpack.c.bf16 %v624_v16, %v623_v15 }
 0x1ea   : > { %v601_v18 = vpop.f32.mrb[36].mxu1 }
 0x1eb   : > { %v602_v19 = vadd.f32 %v1266_v36, %v601_v18  ;;  %v999_v20 = vpop.f32.mrb[37].mxu1  ;;  %1030 = vmatmul.mubr.msk.bf16.gmra.mrb[28].mxu0 %vm674_vm3, %v632_v17 }
 0x1ec   : > { %v604_v21 = vpop.f32.mrb[38].mxu1  ;;  %1033 = vmatprep.mubr.msk.bf16.mxu0 %vm1078_vm1, %v1077_v1 }
 0x1ed   : > { %v605_v22 = vadd.f32 %v1266_v36, %v604_v21  ;;  %v1000_v23 = vpop.f32.mrb[39].mxu1  ;;  %v625_v24 = vmax.f32 %v602_v19, 0.0 }
 0x1ef   : > { %v626_v25 = vmax.f32 %v605_v22, 0.0 }
 0x1f1   : > { %v633_v26 = vpack.c.bf16 %v626_v25, %v625_v24 }
 0x1f2   : > { %v609_v27 = vpop.f32.mrb[40].mxu1 }
 0x1f3   : > { %v610_v28 = vadd.f32 %v1266_v36, %v609_v27  ;;  %v1003_v29 = vpop.f32.mrb[41].mxu1  ;;  %1034 = vmatmul.mubr.msk.bf16.gmra.mrb[32].mxu0 %vm674_vm3, %v633_v26 }
 0x1f4   : > { %v612_v30 = vpop.f32.mrb[42].mxu1  ;;  %1037 = vmatprep.mubr.msk.bf16.mxu0 %vm1078_vm1, %v1077_v1 }
 0x1f5   : > { %v627_v31 = vmax.f32 %v610_v28, 0.0  ;;  %v1004_v32 = vpop.f32.mrb[43].mxu1 }
 0x1f7   : > { %v634_v33 = vpack.c.bf16 %v627_v31, %v627_v31 }
 0x1fb   : > { %1038 = vmatmul.mubr.msk.bf16.gmra.mrb[36].mxu0 %vm674_vm3, %v634_v33 }
 0x29e   : > { %v730_v36 = vpop.f32.mrb[12].mxu0 }
 0x29f   : > { %v731_v1 = vadd.f32 %v880_v34, %v730_v36  ;;  %v1015_v37 = vpop.f32.mrb[13].mxu0 }
 0x2a0   : > { %v733_v35 = vpop.f32.mrb[14].mxu0 }
 0x2a1   : > { %785 = vst.msk [vmem:[%s1308_s25] sm:$0xff] %vm784_vm4, %v731_v1  ;;  %v734_v38 = vadd.f32 %v880_v34, %v733_v35  ;;  %v1016_v39 = vpop.f32.mrb[15].mxu0 }
 0x2a3   : > { %786 = vst.msk [vmem:[%s1308_s25 + $0x8] sm:$0xff] %vm784_vm4, %v734_v38 }
 0x2a6   : > { %v738_v40 = vpop.f32.mrb[16].mxu0 }
 0x2a7   : > { %v739_v41 = vadd.f32 %v880_v34, %v738_v40  ;;  %v1019_v42 = vpop.f32.mrb[17].mxu0 }
 0x2a8   : > { %v741_v43 = vpop.f32.mrb[18].mxu0 }
 0x2a9   : > { %787 = vst.msk [vmem:[%s1308_s25 + $0x10] sm:$0xff] %vm784_vm4, %v739_v41  ;;  %v742_v44 = vadd.f32 %v880_v34, %v741_v43  ;;  %v1020_v45 = vpop.f32.mrb[19].mxu0 }
 0x2ab   : > { %788 = vst.msk [vmem:[%s1308_s25 + $0x18] sm:$0xff] %vm784_vm4, %v742_v44 }
 0x2ae   : > { %v746_v46 = vpop.f32.mrb[20].mxu0 }
 0x2af   : > { %v747_v47 = vadd.f32 %v880_v34, %v746_v46  ;;  %v1023_v48 = vpop.f32.mrb[21].mxu0 }
 0x2b0   : > { %v749_v49 = vpop.f32.mrb[22].mxu0 }
 0x2b1   : > { %789 = vst.msk [vmem:[%s1308_s25 + $0x20] sm:$0xff] %vm784_vm4, %v747_v47  ;;  %v750_v50 = vadd.f32 %v880_v34, %v749_v49  ;;  %v1024_v51 = vpop.f32.mrb[23].mxu0 }
 0x2b3   : > { %790 = vst.msk [vmem:[%s1308_s25 + $0x28] sm:$0xff] %vm784_vm4, %v750_v50 }
 0x2b6   : > { %v754_v52 = vpop.f32.mrb[24].mxu0 }
 0x2b7   : > { %v755_v53 = vadd.f32 %v880_v34, %v754_v52  ;;  %v1027_v54 = vpop.f32.mrb[25].mxu0 }
 0x2b8   : > { %v757_v55 = vpop.f32.mrb[26].mxu0 }
 0x2b9   : > { %791 = vst.msk [vmem:[%s1308_s25 + $0x30] sm:$0xff] %vm784_vm4, %v755_v53  ;;  %v758_v56 = vadd.f32 %v880_v34, %v757_v55  ;;  %v1028_v57 = vpop.f32.mrb[27].mxu0 }
 0x2bb   : > { %792 = vst.msk [vmem:[%s1308_s25 + $0x38] sm:$0xff] %vm784_vm4, %v758_v56 }
 0x2be   : > { %v762_v58 = vpop.f32.mrb[28].mxu0 }
 0x2bf   : > { %v763_v59 = vadd.f32 %v880_v34, %v762_v58  ;;  %v1031_v60 = vpop.f32.mrb[29].mxu0 }
 0x2c0   : > { %v765_v61 = vpop.f32.mrb[30].mxu0 }
 0x2c1   : > { %793 = vst.msk [vmem:[%s1308_s25 + $0x40] sm:$0xff] %vm784_vm4, %v763_v59  ;;  %v766_v62 = vadd.f32 %v880_v34, %v765_v61  ;;  %v1032_v63 = vpop.f32.mrb[31].mxu0 }
 0x2c3   : > { %794 = vst.msk [vmem:[%s1308_s25 + $0x48] sm:$0xff] %vm784_vm4, %v766_v62 }
 0x2c6   : > { %v770_v0 = vpop.f32.mrb[32].mxu0 }
 0x2c7   : > { %v771_v2 = vadd.f32 %v880_v34, %v770_v0  ;;  %v1035_v3 = vpop.f32.mrb[33].mxu0 }
 0x2c8   : > { %v773_v4 = vpop.f32.mrb[34].mxu0 }
 0x2c9   : > { %795 = vst.msk [vmem:[%s1308_s25 + $0x50] sm:$0xff] %vm784_vm4, %v771_v2  ;;  %v774_v5 = vadd.f32 %v880_v34, %v773_v4  ;;  %v1036_v6 = vpop.f32.mrb[35].mxu0 }
 0x2cb   : > { %796 = vst.msk [vmem:[%s1308_s25 + $0x58] sm:$0xff] %vm784_vm4, %v774_v5 }
 0x2ce   : > { %v778_v7 = vpop.f32.mrb[36].mxu0 }
 0x2cf   : > { %v779_v8 = vadd.f32 %v880_v34, %v778_v7  ;;  %v1039_v9 = vpop.f32.mrb[37].mxu0 }
 0x2d0   : > { %v781_v10 = vpop.f32.mrb[38].mxu0 }
 0x2d1   : > { %797 = vst.msk [vmem:[%s1308_s25 + $0x60] sm:$0xff] %vm784_vm4, %v779_v8  ;;  %v1040_v11 = vpop.f32.mrb[39].mxu0 }
 0x2d2 PF: > { %s17_s24 = sadd.s32 1, %s1075_s24  }
 0x2d3   : > { %p14_p4 = scmp.ge.s32.totalorder %s17_s24, 4  }
 0x2d5   :  { %16 = sbr.rel (!%p14_p4) target bundleno = 1 (0x1), region = 78 }

</bundles_post_ra>
